<compile_context>
chip_gen: v7x
topology: tpu7x:2x2x1
jax: 0.10.0
libtpu: 0.0.40
codegen_flags: <defaults>
</compile_context>

<pallas_src>
import functools
import math

import jax
import jax.numpy as jnp
import numpy as np
from jax import lax
from jax.experimental import pallas as pl
from jax.experimental.pallas import tpu as pltpu


_VMEM_LIMIT = 32 * 1024 * 1024   # explicit scoped-VMEM limit, safe on v5e/v6e/v7x
_FULL_TILE_CAP = 1024            # full-dim fallback tiles larger than this get padded


def _round_up(x, m):
    return ((x + m - 1) // m) * m


def _pick_tile(dim, prefs):
    """Largest preferred tile that divides dim; fall back to the full dim."""
    for p in prefs:
        if dim >= p and dim % p == 0:
            return p
    return dim


def _tile_with_pad(dim, prefs, align=128):
    """Return (tile, padded_dim).  Pads to `align` when the full-dimension
    fallback would create a tile > _FULL_TILE_CAP (VMEM guard; matters most on
    v7x's 64 MiB VMEM)."""
    t = _pick_tile(dim, prefs)
    if t <= _FULL_TILE_CAP:
        return t, dim
    padded = _round_up(dim, align)
    return _pick_tile(padded, prefs), padded


# ---------------------------------------------------------------------------
# Tiled linear:  y = x @ w + b
# ---------------------------------------------------------------------------

def _linear_kernel(x_ref, w_ref, b_ref, o_ref, acc_ref):
    k = pl.program_id(2)

    @pl.when(k == 0)
    def _():
        acc_ref[...] = jnp.zeros_like(acc_ref)

    acc_ref[...] += jnp.dot(x_ref[...], w_ref[...],
                            preferred_element_type=jnp.float32)

    @pl.when(k == pl.num_programs(2) - 1)
    def _():
        o_ref[...] = (acc_ref[...] + b_ref[...].astype(jnp.float32)
                      ).astype(o_ref.dtype)


def linear(x2d, w, b, *, out_dtype=None):
    """x2d: (M, K) @ w: (K, N) + b: (1, N) -> (M, N), tiled over (M, N, K).

    The bias may stay fp32 regardless of the activation dtype (exact fp32 add
    inside the kernel)."""
    M, K = x2d.shape
    K2, N = w.shape
    assert K == K2
    out_dtype = out_dtype or x2d.dtype
    if w.dtype != x2d.dtype:
        # Wrapper pre-casts weights at init; this is only a safety net.
        w = w.astype(x2d.dtype)

    tm, Mp = _tile_with_pad(M, (512, 256, 128))
    tn, Np = _tile_with_pad(N, (512, 256, 128))
    tk, Kp = _tile_with_pad(K, (512, 256, 128))

    if (Mp, Kp) != (M, K):
        x2d = jnp.pad(x2d, ((0, Mp - M), (0, Kp - K)))
    if (Kp, Np) != (K, N):
        w = jnp.pad(w, ((0, Kp - K), (0, Np - N)))
    if Np != N:
        b = jnp.pad(b, ((0, 0), (0, Np - N)))

    grid = (Mp // tm, Np // tn, Kp // tk)

    out = pl.pallas_call(
        _linear_kernel,
        out_shape=jax.ShapeDtypeStruct((Mp, Np), out_dtype),
        grid=grid,
        in_specs=[
            pl.BlockSpec((tm, tk), lambda i, j, k: (i, k)),
            pl.BlockSpec((tk, tn), lambda i, j, k: (k, j)),
            # bias block index independent of k -> not re-DMAed per K step
            pl.BlockSpec((1, tn), lambda i, j, k: (0, j)),
        ],
        out_specs=pl.BlockSpec((tm, tn), lambda i, j, k: (i, j)),
        scratch_shapes=[pltpu.VMEM((tm, tn), jnp.float32)],
        compiler_params=pltpu.CompilerParams(
            dimension_semantics=("parallel", "parallel", "arbitrary"),
            vmem_limit_bytes=_VMEM_LIMIT),
    )(x2d, w, b)

    if (Mp, Np) != (M, N):
        out = out[:M, :N]
    return out


# ---------------------------------------------------------------------------
# Flash-attention style causal SDPA (shared kernel body)
# ---------------------------------------------------------------------------

def _flash_kernel(q_ref, k_ref, v_ref, o_ref, m_sc, l_sc, acc_sc, qs_sc, *,
                  approx_recip=True):
    qi = pl.program_id(2)
    ki = pl.program_id(3)
    tq, hd = q_ref.shape
    tk = k_ref.shape[0]

    @pl.when(ki == 0)
    def _():
        m_sc[...] = jnp.full_like(m_sc, -1e30)
        l_sc[...] = jnp.zeros_like(l_sc)
        acc_sc[...] = jnp.zeros_like(acc_sc)
        # Hoist q * 1/sqrt(hd) out of the KV loop (q block resident over ki).
        qs_sc[...] = (q_ref[...].astype(jnp.float32)
                      * (1.0 / math.sqrt(hd))).astype(qs_sc.dtype)

    q_first = qi * tq
    q_last = q_first + (tq - 1)
    k_first = ki * tk
    k_last = k_first + (tk - 1)
    needed = k_first <= q_last      # block has at least one unmasked entry
    crosses = k_last > q_first      # block straddles the causal diagonal

    def scores():
        # Contract over hd directly -- no k.T relayout before the MXU.
        return lax.dot_general(qs_sc[...], k_ref[...],
                               (((1,), (1,)), ((), ())),
                               preferred_element_type=jnp.float32)  # (tq, tk)

    def online_softmax_update(s):
        m_prev = m_sc[...]
        m_new = jnp.maximum(m_prev, jnp.max(s, axis=-1, keepdims=True))
        alpha = jnp.exp(m_prev - m_new)
        p = jnp.exp(s - m_new)                       # fp32 softmax math
        l_sc[...] = alpha * l_sc[...] + jnp.sum(p, axis=-1, keepdims=True)
        acc_sc[...] = alpha * acc_sc[...] + jnp.dot(
            p.astype(v_ref.dtype), v_ref[...],
            preferred_element_type=jnp.float32)
        m_sc[...] = m_new

    # Interior (fully below-diagonal) blocks: no mask VPU work at all.
    @pl.when(jnp.logical_and(needed, jnp.logical_not(crosses)))
    def _():
        online_softmax_update(scores())

    # Diagonal-straddling blocks: build the causal mask in-kernel from iota
    # (no HBM mask traffic).  Large finite negative avoids inf-inf NaNs.
    @pl.when(jnp.logical_and(needed, crosses))
    def _():
        s = scores()
        row = q_first + lax.broadcasted_iota(jnp.int32, (tq, tk), 0)
        col = k_first + lax.broadcasted_iota(jnp.int32, (tq, tk), 1)
        online_softmax_update(jnp.where(col <= row, s, -1e30))

    @pl.when(ki == pl.num_programs(3) - 1)
    def _():
        inv = pl.reciprocal(l_sc[...], approx=approx_recip)  # EUP slot
        o_ref[...] = (acc_sc[...] * inv).astype(o_ref.dtype)


def _flash_scratch(tq, hd, q_dtype):
    return [
        pltpu.VMEM((tq, 1), jnp.float32),    # running max
        pltpu.VMEM((tq, 1), jnp.float32),    # running sum
        pltpu.VMEM((tq, hd), jnp.float32),   # output accumulator
        pltpu.VMEM((tq, hd), q_dtype),       # pre-scaled q
    ]


def _flash_tiles(T):
    tq, tp_q = _tile_with_pad(T, (256, 128))
    tk, tp_k = _tile_with_pad(T, (512, 256, 128))
    assert tp_q == tp_k
    return tq, tk, tp_q


def flash_sdpa(q, k, v, *, approx_recip=True, kv_buffers=None):
    """q, k, v: (B, nh, T, hd) -> (B, nh, T, hd), causal flash attention.

    Fallback path for hd not a multiple of 128."""
    B, nh, T, hd = q.shape
    tq, tk, Tp = _flash_tiles(T)
    if Tp != T:
        pad = ((0, 0), (0, 0), (0, Tp - T), (0, 0))
        q, k, v = jnp.pad(q, pad), jnp.pad(k, pad), jnp.pad(v, pad)
    grid = (B, nh, Tp // tq, Tp // tk)

    def q_index(b, h, qi, ki):
        return (b, h, qi, 0)

    def kv_index(b, h, qi, ki):
        # Clamp causally-skipped steps onto the last needed block so Pallas
        # elides their DMA entirely (the in-kernel guard skips their compute).
        return (b, h, jnp.minimum(ki, (qi * tq + tq - 1) // tk), 0)

    # Optional deeper KV buffering (enable only if a profile shows exposed DMA).
    kv_kwargs = {} if kv_buffers is None else dict(
        pipeline_mode=pl.Buffered(kv_buffers))

    out = pl.pallas_call(
        functools.partial(_flash_kernel, approx_recip=approx_recip),
        out_shape=jax.ShapeDtypeStruct((B, nh, Tp, hd), q.dtype),
        grid=grid,
        in_specs=[
            pl.BlockSpec((None, None, tq, hd), q_index),
            pl.BlockSpec((None, None, tk, hd), kv_index, **kv_kwargs),
            pl.BlockSpec((None, None, tk, hd), kv_index, **kv_kwargs),
        ],
        out_specs=pl.BlockSpec((None, None, tq, hd), q_index),
        scratch_shapes=_flash_scratch(tq, hd, q.dtype),
        compiler_params=pltpu.CompilerParams(
            # parallel B/nh/qi axes keep both v7x TensorCores fed; no-op on
            # single-TC v5e/v6e.
            dimension_semantics=("parallel", "parallel", "parallel",
                                 "arbitrary"),
            vmem_limit_bytes=_VMEM_LIMIT),
    )(q, k, v)
    return out[:, :, :T] if Tp != T else out


def flash_sdpa_fused(qkv, n_head, *, approx_recip=True, kv_buffers=None):
    """qkv: (B, T, 3C) -> (B, T, C).  Reads q/k/v via per-head lane-offset
    block indices straight out of the fused QKV projection (no head
    transposes, no qkv split) and writes a lane-dense (tq, hd) output block.
    Requires hd % 128 == 0 (lane-dim block divisibility)."""
    B, T, C3 = qkv.shape
    C = C3 // 3
    nh = n_head
    hd = C // nh
    assert hd % 128 == 0
    tq, tk, Tp = _flash_tiles(T)
    if Tp != T:
        qkv = jnp.pad(qkv, ((0, 0), (0, Tp - T), (0, 0)))
    grid = (B, nh, Tp // tq, Tp // tk)

    def kv_block(qi, ki):
        return jnp.minimum(ki, (qi * tq + tq - 1) // tk)   # skip-block clamp

    q_spec = pl.BlockSpec((None, tq, hd), lambda b, h, qi, ki: (b, qi, h))
    kv_kwargs = {} if kv_buffers is None else dict(
        pipeline_mode=pl.Buffered(kv_buffers))
    k_spec = pl.BlockSpec(
        (None, tk, hd), lambda b, h, qi, ki: (b, kv_block(qi, ki), nh + h),
        **kv_kwargs)
    v_spec = pl.BlockSpec(
        (None, tk, hd), lambda b, h, qi, ki: (b, kv_block(qi, ki), 2 * nh + h),
        **kv_kwargs)
    o_spec = pl.BlockSpec((None, tq, hd), lambda b, h, qi, ki: (b, qi, h))

    out = pl.pallas_call(
        functools.partial(_flash_kernel, approx_recip=approx_recip),
        out_shape=jax.ShapeDtypeStruct((B, Tp, C), qkv.dtype),
        grid=grid,
        in_specs=[q_spec, k_spec, v_spec],
        out_specs=o_spec,
        scratch_shapes=_flash_scratch(tq, hd, qkv.dtype),
        compiler_params=pltpu.CompilerParams(
            dimension_semantics=("parallel", "parallel", "parallel",
                                 "arbitrary"),
            vmem_limit_bytes=_VMEM_LIMIT),
    )(qkv, qkv, qkv)
    return out[:, :T] if Tp != T else out


# ---------------------------------------------------------------------------
# Module wrapper (parameter setup + glue in plain JAX)
# ---------------------------------------------------------------------------

class CausalSelfAttentionPallas:
    """Non-sparse, inference-time CausalSelfAttention forward.

    Pass dtype=jnp.bfloat16 (and bf16 x) to use the bf16 MXU path on v6e/v7x;
    accumulation, softmax and bias math stay fp32 in-kernel regardless of the
    input dtype (v5e-safe: no bf16 VPU/EUP work is emitted)."""

    def __init__(self, n_embd, n_head, block_size, key, dtype=jnp.float32):
        assert n_embd % n_head == 0
        self.n_embd = n_embd
        self.n_head = n_head
        self.block_size = block_size
        k1, k2 = jax.random.split(key)
        # Weights stored in the activation dtype once at init (no per-call
        # astype of weight matrices); biases stay fp32 for an exact add.
        self.w_attn = (jax.random.normal(k1, (n_embd, 3 * n_embd), jnp.float32)
                       * 0.02).astype(dtype)
        self.b_attn = jnp.zeros((1, 3 * n_embd), jnp.float32)
        self.w_proj = (jax.random.normal(k2, (n_embd, n_embd), jnp.float32)
                       * 0.02).astype(dtype)
        self.b_proj = jnp.zeros((1, n_embd), jnp.float32)

    def __call__(self, x, materialize_attn_mask=False):
        B, T, C = x.shape
        nh = self.n_head
        hd = C // nh

        # qkv projection (tiled Pallas matmul)
        qkv = linear(x.reshape(B * T, C), self.w_attn, self.b_attn)
        qkv = qkv.reshape(B, T, 3 * C)

        if hd % 128 == 0:
            # No-transpose path: attention reads q/k/v directly out of the
            # fused qkv tensor and writes the (B, T, C) layout (lane-dense).
            y = flash_sdpa_fused(qkv, nh)
        else:
            # TODO(synk): for hd < 128, pack 128/hd heads per grid step so the
            # attention output is lane-dense; for now fall back to the
            # transposed (B, nh, T, hd) layout (XLA transposes outside the
            # kernels).
            q, k, v = jnp.split(qkv, 3, axis=2)
            q = q.reshape(B, T, nh, hd).transpose(0, 2, 1, 3)
            k = k.reshape(B, T, nh, hd).transpose(0, 2, 1, 3)
            v = v.reshape(B, T, nh, hd).transpose(0, 2, 1, 3)
            y = flash_sdpa(q, k, v)
            y = y.transpose(0, 2, 1, 3).reshape(B, T, C)

        # output projection (tiled Pallas matmul); dropout p=0 -> identity
        y = linear(y.reshape(B * T, C), self.w_proj, self.b_proj)
        y = y.reshape(B, T, C)

        # Additive causal mask matching the PyTorch module.  It is NOT a
        # kernel input; returned broadcastable as (1,1,T,T) by default instead
        # of materializing O(B*T^2) HBM.
        causal = jnp.tril(jnp.ones((T, T), x.dtype))
        attn_mask = jnp.where(causal == 0,
                              jnp.asarray(-jnp.inf, x.dtype),
                              jnp.asarray(0.0, x.dtype))[None, None]
        if materialize_attn_mask:
            attn_mask = jnp.broadcast_to(attn_mask, (B, 1, T, T))

        cumprobs = 0  # non-sparse path
        return y, cumprobs, attn_mask


# ---------------------------------------------------------------------------
# Plain-JAX reference (for correctness check)
# ---------------------------------------------------------------------------

def _reference_forward(x, w_attn, b_attn, w_proj, b_proj, n_head):
    B, T, C = x.shape
    hd = C // n_head
    qkv = x.reshape(B * T, C) @ w_attn.astype(jnp.float32) + b_attn
    q, k, v = jnp.split(qkv.reshape(B, T, 3 * C), 3, axis=2)
    q = q.reshape(B, T, n_head, hd).transpose(0, 2, 1, 3)
    k = k.reshape(B, T, n_head, hd).transpose(0, 2, 1, 3)
    v = v.reshape(B, T, n_head, hd).transpose(0, 2, 1, 3)
    s = jnp.einsum("bhqd,bhkd->bhqk", q, k) / math.sqrt(hd)
    causal = jnp.tril(jnp.ones((T, T)))
    s = jnp.where(causal == 0, -jnp.inf, s)
    p = jax.nn.softmax(s, axis=-1)
    y = jnp.einsum("bhqk,bhkd->bhqd", p, v)
    y = (y.transpose(0, 2, 1, 3).reshape(B * T, C)
         @ w_proj.astype(jnp.float32) + b_proj)
    return y.reshape(B, T, C)


def _run_case(B, T, C, n_head, key):
    k_param, k_x = jax.random.split(key)
    attn = CausalSelfAttentionPallas(C, n_head, block_size=T, key=k_param)
    x = jax.random.normal(k_x, (B, T, C), jnp.float32)

    y, cumprobs, attn_mask = attn(x)
    jax.block_until_ready(y)
    jax.block_until_ready(attn_mask)

    assert y.shape == (B, T, C)
    assert attn_mask.shape[-2:] == (T, T)

    y_ref = _reference_forward(x, attn.w_attn, attn.b_attn,
                               attn.w_proj, attn.b_proj, n_head)
    np.testing.assert_allclose(np.asarray(y), np.asarray(y_ref),
                               rtol=2e-2, atol=2e-2)


if __name__ == "__main__":
    key = jax.random.PRNGKey(0)
    k1, k2 = jax.random.split(key)
    # hd = 8: transposed (B, nh, T, hd) fallback attention path.
    _run_case(B=2, T=8, C=32, n_head=4, key=k1)
    # hd = 128: fused no-transpose / lane-dense attention path.
    _run_case(B=2, T=16, C=256, n_head=2, key=k2)
    print("KERNEL_OK")
</pallas_src>

<mosaic_0001>
module attributes {stable_mosaic.version = 11 : i64} {
  func.func @_linear_kernel(%arg0: i32, %arg1: i32, %arg2: i32, %arg3: memref<16x32xf32, #tpu.memory_space<vmem>>, %arg4: memref<32x96xf32, #tpu.memory_space<vmem>>, %arg5: memref<1x96xf32, #tpu.memory_space<vmem>>, %arg6: memref<16x96xf32, #tpu.memory_space<vmem>>, %arg7: memref<16x96xf32, #tpu.memory_space<vmem>>) attributes {dimension_semantics = [#tpu.dimension_semantics<parallel>, #tpu.dimension_semantics<parallel>, #tpu.dimension_semantics<arbitrary>], iteration_bounds = array<i64: 1, 1, 1>, scalar_prefetch = 0 : i64, scratch_operands = 1 : i64, tpu.core_type = #tpu.core_type<tc>, window_params = [{transform_indices = @transform_0, window_bounds = array<i64: 16, 32>}, {transform_indices = @transform_1, window_bounds = array<i64: 32, 96>}, {transform_indices = @transform_2, window_bounds = array<i64: 1, 96>}, {transform_indices = @transform_3, window_bounds = array<i64: 16, 96>}]} {
    %c0_i32 = arith.constant 0 : i32
    %0 = arith.cmpi eq, %arg2, %c0_i32 : i32
    %1 = arith.extui %0 : i1 to i32
    %c0_i32_0 = arith.constant 0 : i32
    %2 = arith.cmpi ne, %1, %c0_i32_0 : i32
    scf.if %2 {
      %cst_10 = arith.constant 0.000000e+00 : f32
      %12 = vector.broadcast %cst_10 : f32 to vector<16x96xf32>
      %c0_11 = arith.constant 0 : index
      %c0_12 = arith.constant 0 : index
      %13 = vector.load %arg7[%c0_11, %c0_12] : memref<16x96xf32, #tpu.memory_space<vmem>>, vector<16x96xf32>
      tpu.vector_store %arg7[%c0_11, %c0_12], %12 {strides = array<i32>} : memref<16x96xf32, #tpu.memory_space<vmem>>, vector<16x96xf32>,
    } else {
    }
    %c0 = arith.constant 0 : index
    %c0_1 = arith.constant 0 : index
    %3 = vector.load %arg7[%c0, %c0_1] : memref<16x96xf32, #tpu.memory_space<vmem>>, vector<16x96xf32>
    %c0_2 = arith.constant 0 : index
    %c0_3 = arith.constant 0 : index
    %4 = vector.load %arg3[%c0_2, %c0_3] : memref<16x32xf32, #tpu.memory_space<vmem>>, vector<16x32xf32>
    %c0_4 = arith.constant 0 : index
    %c0_5 = arith.constant 0 : index
    %5 = vector.load %arg4[%c0_4, %c0_5] : memref<32x96xf32, #tpu.memory_space<vmem>>, vector<32x96xf32>
    %cst = arith.constant dense<0.000000e+00> : vector<16x96xf32>
    %6 = tpu.matmul %4, %5, %cst {dimension_numbers = #tpu.dot_dimension_numbers<[1], [0], [0], [1], [0, 0, 1, 1], [], []>} : vector<16x32xf32>, vector<32x96xf32>, vector<16x96xf32> -> vector<16x96xf32>
    %7 = arith.addf %3, %6 : vector<16x96xf32>
    %c0_6 = arith.constant 0 : index
    %c0_7 = arith.constant 0 : index
    %8 = vector.load %arg7[%c0_6, %c0_7] : memref<16x96xf32, #tpu.memory_space<vmem>>, vector<16x96xf32>
    tpu.vector_store %arg7[%c0_6, %c0_7], %7 {strides = array<i32>} : memref<16x96xf32, #tpu.memory_space<vmem>>, vector<16x96xf32>,
    %c0_i32_8 = arith.constant 0 : i32
    %9 = arith.cmpi eq, %arg2, %c0_i32_8 : i32
    %10 = arith.extui %9 : i1 to i32
    %c0_i32_9 = arith.constant 0 : i32
    %11 = arith.cmpi ne, %10, %c0_i32_9 : i32
    scf.if %11 {
      %c0_10 = arith.constant 0 : index
      %c0_11 = arith.constant 0 : index
      %12 = vector.load %arg7[%c0_10, %c0_11] : memref<16x96xf32, #tpu.memory_space<vmem>>, vector<16x96xf32>
      %c0_12 = arith.constant 0 : index
      %c0_13 = arith.constant 0 : index
      %13 = vector.load %arg5[%c0_12, %c0_13] : memref<1x96xf32, #tpu.memory_space<vmem>>, vector<1x96xf32>
      %14 = vector.broadcast %13 : vector<1x96xf32> to vector<16x96xf32>
      %15 = arith.addf %12, %14 : vector<16x96xf32>
      %c0_14 = arith.constant 0 : index
      %c0_15 = arith.constant 0 : index
      %16 = vector.load %arg6[%c0_14, %c0_15] : memref<16x96xf32, #tpu.memory_space<vmem>>, vector<16x96xf32>
      tpu.vector_store %arg6[%c0_14, %c0_15], %15 {strides = array<i32>} : memref<16x96xf32, #tpu.memory_space<vmem>>, vector<16x96xf32>,
    } else {
    }
    return
  }
  func.func @transform_0(%arg0: i32, %arg1: i32, %arg2: i32) -> (i32, i32) {
    %c0_i32 = arith.constant 0 : i32
    return %arg0, %arg2 : i32, i32
  }
  func.func @transform_1(%arg0: i32, %arg1: i32, %arg2: i32) -> (i32, i32) {
    %c0_i32 = arith.constant 0 : i32
    return %arg2, %arg1 : i32, i32
  }
  func.func @transform_2(%arg0: i32, %arg1: i32, %arg2: i32) -> (i32, i32) {
    %c0_i32 = arith.constant 0 : i32
    %c0_i32_0 = arith.constant 0 : i32
    return %c0_i32, %arg1 : i32, i32
  }
  func.func @transform_3(%arg0: i32, %arg1: i32, %arg2: i32) -> (i32, i32) {
    %c0_i32 = arith.constant 0 : i32
    return %arg0, %arg1 : i32, i32
  }
}

</mosaic_0001>

<bundles_post_ra>
// kernel: tpu_custom_call.1
= control target key start
LH: loop header
LB: loop body
LE: loop exit
PB: predicated region body
PF: predicated region fallthrough
CT: control target
= control target key end

     0   :  { %8 = vsyncpa [#allocation4], 0  ;;  %s365_s0 = inlined_call_operand.hbm [shape: f32[16,32], index: 0, kind: input, shape index: {}]   ;;  %s366_s1 = inlined_call_operand.hbm [shape: f32[32,96], index: 1, kind: input, shape index: {}]   ;;  %s367_s2 = inlined_call_operand.vmem [shape: f32[1,96], index: 2, kind: input, shape index: {}]   ;;  %s368_s3 = inlined_call_operand.hbm [shape: f32[16,96], index: 3, kind: output, shape index: {}]  }
   0x1   :  { %9 = vsyncpa [#allocation7], 0 }
   0x2   :  { %10 = vsyncpa [#allocation5], 0  ;;  %s285_s12 = smov [#allocation3]   ;;  %s213_s16 = scalar_lea.hbm %s365_s0, 256 }
   0x3   :  { %s16_s13 = sshll.u32 %s285_s12, 4  ;;  %p214_p0 = scmp.ne.s32.totalorder %s365_s0, %s213_s16  ;;  %s17_s13 = int_to_ptr.vmem [resolvable:$true] %s16_s13 }
   0x4   :  { %p217_p1 = scmp.lt.u32.totalorder %s213_s16, %s365_s0 }
   0x6   :  { %p219_p2 = pnand %p217_p1, %p214_p0 }
   0x8   :  { %222 = shalt.err (!%p219_p2)
}
   0x9   :  { %s223_s21 = scalar_lea.vmem %s17_s13, 256  ;;  %p228_p4 = scmp.lt.s32.totalorder %s17_s13, %s17_s13 }
   0xa   :  { %p224_p3 = scmp.ne.s32.totalorder %s17_s13, %s223_s21  ;;  %p229_p5 = scmp.lt.s32.totalorder %s223_s21, %s223_s21 }
   0xc   :  { %p230_p6 = por %p229_p5, %p228_p4 }
   0xe   :  { %p231_p7 = pnand %p230_p6, %p224_p3 }
  0x10   :  { %234 = shalt.err (!%p231_p7)
}
  0x11   :  { %s286_s22 = smov 128   ;;  %s287_s23 = smov 8  }
  0x12   :  { %22 = dma.hbm_to_vmem [thread:$0]  %s365_s0, 256, %s17_s13, [#allocation4], %s286_s22, %s286_s22, %s287_s23  }
  0x13   :  { %s288_s26 = smov [#allocation6]   ;;  %s235_s30 = scalar_lea.hbm %s366_s1, 512 }
  0x14   :  { %s28_s27 = sshll.u32 %s288_s26, 4  ;;  %p236_p8 = scmp.ne.s32.totalorder %s366_s1, %s235_s30  ;;  %s29_s27 = int_to_ptr.vmem [resolvable:$true] %s28_s27 }
  0x15   :  { %p239_p9 = scmp.lt.u32.totalorder %s235_s30, %s366_s1 }
  0x17   :  { %p241_p10 = pnand %p239_p9, %p236_p8 }
  0x19   :  { %244 = shalt.err (!%p241_p10)
}
  0x1a   :  { %s245_s8 = scalar_lea.vmem %s29_s27, 512  ;;  %p250_p12 = scmp.lt.s32.totalorder %s29_s27, %s29_s27 }
  0x1b   :  { %p246_p11 = scmp.ne.s32.totalorder %s29_s27, %s245_s8  ;;  %p251_p13 = scmp.lt.s32.totalorder %s245_s8, %s245_s8 }
  0x1d   :  { %p252_p0 = por %p251_p13, %p250_p12 }
  0x1f   :  { %p253_p1 = pnand %p252_p0, %p246_p11 }
  0x21   :  { %256 = shalt.err (!%p253_p1)
}
  0x22   :  { %34 = dma.hbm_to_vmem [thread:$0]  %s366_s1, 512, %s29_s27, [#allocation7], %s286_s22, %s286_s22, %s287_s23  }
  0x23   :  { %279 = dma.done.wait [#allocation4], 256  }
  0x24   :  { %280 = vsyncadd [#allocation4], 4294967040 }
  0x25   :  { %281 = dma.done.wait [#allocation7], 512  }
  0x26   :  { %282 = vsyncadd [#allocation7], 4294966784  ;;  %vm47_vm0 = vcmask 785408   ;;  %v289_v0 = vmov 0.0   ;;  %vm58_vm1 = vcmask 261120   ;;  %v54_v1 = vld [vmem:[#allocation6] sm:$0xff] }
  0x27   :  { %49 = vst.msk [vmem:[#allocation2 + $0x8] sm:$0xff] %vm47_vm0, %v289_v0  ;;  %48 = vst.msk [vmem:[#allocation2] sm:$0xff] %vm47_vm0, %v289_v0  ;;  %v55_v2 = vld [vmem:[#allocation6 + $0x8] sm:$0xff]  ;;  %v56_v3 = vld [vmem:[#allocation6 + $0x10] sm:$0xff]  ;;  %s290_s11 = smov [#allocation8]  }
  0x28   :  { %v199_v4 = vpack.c.bf16 %v55_v2, %v54_v1  ;;  %v57_v5 = vld [vmem:[#allocation6 + $0x18] sm:$0xff]  ;;  %v52_v6 = vld [vmem:[#allocation3] sm:$0xff]  ;;  %v181_v15 = vld [vmem:[%s367_s2] ss:$0 sm:$0xff]  ;;  %s166_s12 = sshll.u32 %s290_s11, 4  ;;  %s167_s12 = int_to_ptr.vmem [resolvable:$true] %s166_s12 }
  0x29   :  { %v203_v7 = vpack.c.bf16 %v57_v5, %v56_v3  ;;  %196 = vmatprep.mubr.msk.f32.mxu0 %vm58_vm1, %v52_v6  ;;  %v53_v8 = vld [vmem:[#allocation3 + $0x8] sm:$0xff]  ;;  %s257_s13 = scalar_lea.vmem %s167_s12, 256  ;;  %p262_p3 = scmp.lt.s32.totalorder %s167_s12, %s167_s12 }
  0x2a   :  { %200 = vmatprep.subr.bf16.mxu0 %v199_v4  ;;  %p258_p2 = scmp.ne.s32.totalorder %s167_s12, %s257_s13  ;;  %p263_p4 = scmp.lt.s32.totalorder %s257_s13, %s257_s13 }
  0x2b   :  { %202 = vmatpush3.bf16.msra.mxu0 %v199_v4 }
  0x2c   :  { %204 = vmatprep.subr.bf16.mxu0 %v203_v7  ;;  %p264_p5 = por %p263_p4, %p262_p3 }
  0x2e   :  { %v51_v9 = vld [vmem:[#allocation2 + $0x8] sm:$0xff]  ;;  %v50_v10 = vld [vmem:[#allocation2] sm:$0xff]  ;;  %p265_p6 = pnand %p264_p5, %p258_p2 }
  0x2f   :  { %206 = vmatpush3.bf16.msra.mxu0 %v203_v7 }
  0x32   :  { %197 = vmatmul.mubr.msk.f32.vlgmr.msra.gmra.mrb[0].mxu0 %vm58_vm1, %v53_v8 }
 0x105   :  { %v198_v11 = vpop.f32.mrb[0].mxu0 }
 0x106   :  { %v141_v12 = vadd.f32 %v198_v11, %v51_v9  ;;  %v131_v13 = vpop.f32.mrb[1].mxu0 }
 0x107   :  { %v140_v14 = vadd.f32 %v131_v13, %v50_v10 }
 0x108   :  { %144 = vst.msk [vmem:[#allocation2 + $0x8] sm:$0xff] %vm47_vm0, %v141_v12 }
 0x109   :  { %143 = vst.msk [vmem:[#allocation2] sm:$0xff] %vm47_vm0, %v140_v14 }
 0x10f   :  { %v149_v16 = vld [vmem:[#allocation2 + $0x8] sm:$0xff] }
 0x110   :  { %v148_v17 = vld [vmem:[#allocation2] sm:$0xff]  ;;  %v158_v18 = vadd.f32 %v181_v15, %v149_v16 }
 0x111   :  { %v157_v19 = vadd.f32 %v181_v15, %v148_v17 }
 0x112   :  { %160 = vst.msk [vmem:[#allocation8 + $0x8] sm:$0xff] %vm47_vm0, %v158_v18 }
 0x113   :  { %159 = vst.msk [vmem:[#allocation8] sm:$0xff] %vm47_vm0, %v157_v19 }
 0x114   :  { %268 = shalt.err (!%p265_p6)
}
 0x115   :  { %s269_s15 = scalar_lea.hbm %s368_s3, 256 }
 0x116   :  { %p270_p7 = scmp.ne.s32.totalorder %s368_s3, %s269_s15  ;;  %p273_p8 = scmp.lt.u32.totalorder %s269_s15, %s368_s3 }
 0x118   :  { %p275_p9 = pnand %p273_p8, %p270_p7 }
 0x11a   :  { %278 = shalt.err (!%p275_p9)
}
 0x11b   :  { %172 = dma.vmem_to_hbm [thread:$0]  %s167_s12, 256, %s368_s3, [#allocation5], %s286_s22, %s286_s22, %s287_s23  }
 0x11c   :  { %283 = dma.done.wait [#allocation5], 256  }
 0x11d   :  { %284 = vsyncadd [#allocation5], 4294967040 }
 0x11e   :  { %176 = vsyncpa [#allocation4], 1 }
 0x11f   :  { %177 = vsyncpa [#allocation7], 1 }
 0x120   :  { %178 = vsyncpa [#allocation5], 1 }

</bundles_post_ra>
